<compile_context>
chip_gen: v6e
topology: v6e:2x2x1
jax: 0.10.0
libtpu: 0.0.40
codegen_flags: <defaults>
</compile_context>

<pallas_src>
import math

import jax
import jax.numpy as jnp
from jax.experimental import pallas as pl
from jax.experimental.pallas import tpu as pltpu


# ----------------------------------------------------------------------------
# Kernel: one batch element's full [S, D] slice per grid step.
# ----------------------------------------------------------------------------
def convnet1d_kernel(x_ref, w1_ref, b1_ref, w2_ref, b2_ref, o_ref,
                     xpad_ref, hpad_ref):
    # x_ref : (1, S, Din)        w1_ref: (K, Din, Dhid)    b1_ref: (1, Dhid)
    # o_ref : (1, S, Din)        w2_ref: (K, Dhid, Din)    b2_ref: (1, Din)
    # xpad_ref: (S + K - 1, Din) f32 scratch
    # hpad_ref: (S + K - 1, Dhid) f32 scratch
    S = x_ref.shape[1]
    Din = x_ref.shape[2]
    K, _, Dhid = w1_ref.shape
    pad_l = (K - 1) // 2  # torch Conv1d padding='same' left pad (matches XLA SAME)

    # ---- conv 1: Din -> Dhid, then ReLU -------------------------------------
    xpad_ref[...] = jnp.zeros_like(xpad_ref)
    xpad_ref[pad_l:pad_l + S, :] = x_ref[0].astype(jnp.float32)

    acc = jnp.broadcast_to(b1_ref[...], (S, Dhid)).astype(jnp.float32)
    for t in range(K):  # K is a small static Python int -> fully unrolled
        acc = acc + jnp.dot(xpad_ref[t:t + S, :], w1_ref[t],
                            preferred_element_type=jnp.float32)
    h = jnp.maximum(acc, 0.0)

    # ---- conv 2: Dhid -> Din, then ReLU -------------------------------------
    hpad_ref[...] = jnp.zeros_like(hpad_ref)
    hpad_ref[pad_l:pad_l + S, :] = h

    acc2 = jnp.broadcast_to(b2_ref[...], (S, Din)).astype(jnp.float32)
    for t in range(K):
        acc2 = acc2 + jnp.dot(hpad_ref[t:t + S, :], w2_ref[t],
                              preferred_element_type=jnp.float32)
    o_ref[0] = jnp.maximum(acc2, 0.0).astype(o_ref.dtype)


# ----------------------------------------------------------------------------
# Wrapper.
#   x  : [B, S, d_model]
#   w1 : [K, d_model, d_hid]   (per-tap matrices; torch weight[:, :, t].T)
#   b1 : [d_hid]
#   w2 : [K, d_hid, d_model]
#   b2 : [d_model]
# ----------------------------------------------------------------------------
def convnet1d(x, w1, b1, w2, b2):
    B, S, Din = x.shape
    K, _, Dhid = w1.shape
    assert w2.shape == (K, Dhid, Din)

    b1_2d = b1.reshape(1, Dhid)
    b2_2d = b2.reshape(1, Din)

    return pl.pallas_call(
        convnet1d_kernel,
        out_shape=jax.ShapeDtypeStruct((B, S, Din), x.dtype),
        grid=(B,),
        in_specs=[
            pl.BlockSpec((1, S, Din), lambda b: (b, 0, 0)),
            # Weights / biases: constant block index -> fetched once, kept
            # resident in VMEM across all (parallel) batch steps.
            pl.BlockSpec((K, Din, Dhid), lambda b: (0, 0, 0)),
            pl.BlockSpec((1, Dhid), lambda b: (0, 0)),
            pl.BlockSpec((K, Dhid, Din), lambda b: (0, 0, 0)),
            pl.BlockSpec((1, Din), lambda b: (0, 0)),
        ],
        out_specs=pl.BlockSpec((1, S, Din), lambda b: (b, 0, 0)),
        scratch_shapes=[
            pltpu.VMEM((S + K - 1, Din), jnp.float32),
            pltpu.VMEM((S + K - 1, Dhid), jnp.float32),
        ],
        compiler_params=pltpu.CompilerParams(
            dimension_semantics=("parallel",)),
    )(x, w1, b1_2d, w2, b2_2d)
    # TODO(synk): for very long sequences / wide channels, additionally tile the
    # seq axis with a (K-1)-halo to keep per-step VMEM within v7x's 64 MiB budget.


if __name__ == "__main__":
    # Small shapes consistent with the module: x is [batch, seq_len, d_model].
    batch, seq_len, d_model, d_hid_ker, kernel_sz = 2, 8, 32, 48, 3

    key = jax.random.PRNGKey(0)
    kx, kw1, kw2 = jax.random.split(key, 3)

    x = jax.random.normal(kx, (batch, seq_len, d_model), dtype=jnp.float32)

    # Weights in torch Conv1d layout [out_ch, in_ch, K]; xavier_normal_ with
    # gain sqrt(2/5) and zero biases, matching init_weights().
    gain = (2.0 / 5.0) ** 0.5

    def xavier_normal(k, cout, cin, ksz):
        std = gain * math.sqrt(2.0 / ((cin + cout) * ksz))
        return std * jax.random.normal(k, (cout, cin, ksz), dtype=jnp.float32)

    weight1 = xavier_normal(kw1, d_hid_ker, d_model, kernel_sz)   # [H, D, K]
    weight2 = xavier_normal(kw2, d_model, d_hid_ker, kernel_sz)   # [D, H, K]
    bias1 = jnp.zeros((d_hid_ker,), jnp.float32)
    bias2 = jnp.zeros((d_model,), jnp.float32)

    # Kernel layout: per-tap [K, in, out] matrices  (w[t][ci, co] = weight[co, ci, t]).
    w1 = jnp.transpose(weight1, (2, 1, 0))   # [K, d_model, d_hid]
    w2 = jnp.transpose(weight2, (2, 1, 0))   # [K, d_hid, d_model]

    out = convnet1d(x, w1, bias1, w2, bias2)
    out = jax.block_until_ready(out)

    # Pure-JAX reference of the PyTorch forward (independent formulation via lax.conv).
    def torch_conv1d_same(x_bsd, weight_oik, bias):
        x_bcs = jnp.transpose(x_bsd, (0, 2, 1))            # [B, C, S]
        y = jax.lax.conv_general_dilated(
            x_bcs, weight_oik, window_strides=(1,), padding="SAME",
            dimension_numbers=("NCH", "OIH", "NCH"))
        y = y + bias[None, :, None]
        return jnp.transpose(y, (0, 2, 1))                  # [B, S, C]

    ref = jnp.maximum(torch_conv1d_same(x, weight1, bias1), 0.0)
    ref = jnp.maximum(torch_conv1d_same(ref, weight2, bias2), 0.0)

    assert out.shape == (batch, seq_len, d_model)
    # Loose-ish tolerance: MXU f32 matmuls use multi-pass bf16 decomposition;
    # any real bug (tap order / padding / transpose) produces O(1) errors.
    assert jnp.allclose(out, ref, atol=2e-3, rtol=2e-3), float(
        jnp.max(jnp.abs(out - ref)))

    print("KERNEL_OK")
</pallas_src>

<mosaic_0001>
module attributes {stable_mosaic.version = 11 : i64} {
  func.func @convnet1d_kernel(%arg0: i32, %arg1: memref<1x8x32xf32, #tpu.memory_space<vmem>>, %arg2: memref<3x32x48xf32, #tpu.memory_space<vmem>>, %arg3: memref<1x48xf32, #tpu.memory_space<vmem>>, %arg4: memref<3x48x32xf32, #tpu.memory_space<vmem>>, %arg5: memref<1x32xf32, #tpu.memory_space<vmem>>, %arg6: memref<1x8x32xf32, #tpu.memory_space<vmem>>, %arg7: memref<10x32xf32, #tpu.memory_space<vmem>>, %arg8: memref<10x48xf32, #tpu.memory_space<vmem>>) attributes {dimension_semantics = [#tpu.dimension_semantics<parallel>], iteration_bounds = array<i64: 2>, scalar_prefetch = 0 : i64, scratch_operands = 2 : i64, tpu.core_type = #tpu.core_type<tc>, window_params = [{transform_indices = @transform_0, window_bounds = array<i64: 1, 8, 32>}, {pipeline_mode = #tpu.pipeline_mode<synchronous>, transform_indices = @transform_1, window_bounds = array<i64: 3, 32, 48>}, {pipeline_mode = #tpu.pipeline_mode<synchronous>, transform_indices = @transform_2, window_bounds = array<i64: 1, 48>}, {pipeline_mode = #tpu.pipeline_mode<synchronous>, transform_indices = @transform_3, window_bounds = array<i64: 3, 48, 32>}, {pipeline_mode = #tpu.pipeline_mode<synchronous>, transform_indices = @transform_4, window_bounds = array<i64: 1, 32>}, {transform_indices = @transform_5, window_bounds = array<i64: 1, 8, 32>}]} {
    %cst = arith.constant 0.000000e+00 : f32
    %0 = vector.broadcast %cst : f32 to vector<10x32xf32>
    %c0 = arith.constant 0 : index
    %c0_0 = arith.constant 0 : index
    %1 = vector.load %arg7[%c0, %c0_0] : memref<10x32xf32, #tpu.memory_space<vmem>>, vector<10x32xf32>
    tpu.vector_store %arg7[%c0, %c0_0], %0 {strides = array<i32>} : memref<10x32xf32, #tpu.memory_space<vmem>>, vector<10x32xf32>,
    %c0_1 = arith.constant 0 : index
    %c0_2 = arith.constant 0 : index
    %c0_3 = arith.constant 0 : index
    %2 = vector.load %arg1[%c0_1, %c0_2, %c0_3] : memref<1x8x32xf32, #tpu.memory_space<vmem>>, vector<1x8x32xf32>
    %3 = vector.shape_cast %2 : vector<1x8x32xf32> to vector<8x32xf32>
    %c1 = arith.constant 1 : index
    %c0_4 = arith.constant 0 : index
    %4 = vector.load %arg7[%c1, %c0_4] : memref<10x32xf32, #tpu.memory_space<vmem>>, vector<8x32xf32>
    tpu.vector_store %arg7[%c1, %c0_4], %3 {strides = array<i32>} : memref<10x32xf32, #tpu.memory_space<vmem>>, vector<8x32xf32>,
    %c0_5 = arith.constant 0 : index
    %c0_6 = arith.constant 0 : index
    %5 = vector.load %arg3[%c0_5, %c0_6] : memref<1x48xf32, #tpu.memory_space<vmem>>, vector<1x48xf32>
    %6 = vector.shape_cast %5 : vector<1x48xf32> to vector<1x48xf32>
    %7 = vector.broadcast %6 : vector<1x48xf32> to vector<8x48xf32>
    %c0_7 = arith.constant 0 : index
    %c0_8 = arith.constant 0 : index
    %8 = vector.load %arg7[%c0_7, %c0_8] : memref<10x32xf32, #tpu.memory_space<vmem>>, vector<8x32xf32>
    %c0_9 = arith.constant 0 : index
    %c0_10 = arith.constant 0 : index
    %c0_11 = arith.constant 0 : index
    %9 = vector.load %arg2[%c0_9, %c0_10, %c0_11] : memref<3x32x48xf32, #tpu.memory_space<vmem>>, vector<1x32x48xf32>
    %10 = vector.shape_cast %9 : vector<1x32x48xf32> to vector<32x48xf32>
    %cst_12 = arith.constant dense<0.000000e+00> : vector<8x48xf32>
    %11 = tpu.matmul %8, %10, %cst_12 {dimension_numbers = #tpu.dot_dimension_numbers<[1], [0], [0], [1], [0, 0, 1, 1], [], []>} : vector<8x32xf32>, vector<32x48xf32>, vector<8x48xf32> -> vector<8x48xf32>
    %12 = arith.addf %7, %11 : vector<8x48xf32>
    %c1_13 = arith.constant 1 : index
    %c0_14 = arith.constant 0 : index
    %13 = vector.load %arg7[%c1_13, %c0_14] : memref<10x32xf32, #tpu.memory_space<vmem>>, vector<8x32xf32>
    %c1_15 = arith.constant 1 : index
    %c0_16 = arith.constant 0 : index
    %c0_17 = arith.constant 0 : index
    %14 = vector.load %arg2[%c1_15, %c0_16, %c0_17] : memref<3x32x48xf32, #tpu.memory_space<vmem>>, vector<1x32x48xf32>
    %15 = vector.shape_cast %14 : vector<1x32x48xf32> to vector<32x48xf32>
    %cst_18 = arith.constant dense<0.000000e+00> : vector<8x48xf32>
    %16 = tpu.matmul %13, %15, %cst_18 {dimension_numbers = #tpu.dot_dimension_numbers<[1], [0], [0], [1], [0, 0, 1, 1], [], []>} : vector<8x32xf32>, vector<32x48xf32>, vector<8x48xf32> -> vector<8x48xf32>
    %17 = arith.addf %12, %16 : vector<8x48xf32>
    %c2 = arith.constant 2 : index
    %c0_19 = arith.constant 0 : index
    %18 = vector.load %arg7[%c2, %c0_19] : memref<10x32xf32, #tpu.memory_space<vmem>>, vector<8x32xf32>
    %c2_20 = arith.constant 2 : index
    %c0_21 = arith.constant 0 : index
    %c0_22 = arith.constant 0 : index
    %19 = vector.load %arg2[%c2_20, %c0_21, %c0_22] : memref<3x32x48xf32, #tpu.memory_space<vmem>>, vector<1x32x48xf32>
    %20 = vector.shape_cast %19 : vector<1x32x48xf32> to vector<32x48xf32>
    %cst_23 = arith.constant dense<0.000000e+00> : vector<8x48xf32>
    %21 = tpu.matmul %18, %20, %cst_23 {dimension_numbers = #tpu.dot_dimension_numbers<[1], [0], [0], [1], [0, 0, 1, 1], [], []>} : vector<8x32xf32>, vector<32x48xf32>, vector<8x48xf32> -> vector<8x48xf32>
    %22 = arith.addf %17, %21 : vector<8x48xf32>
    %cst_24 = arith.constant 0.000000e+00 : f32
    %23 = vector.broadcast %cst_24 : f32 to vector<8x48xf32>
    %24 = arith.maximumf %22, %23 : vector<8x48xf32>
    %cst_25 = arith.constant 0.000000e+00 : f32
    %25 = vector.broadcast %cst_25 : f32 to vector<10x48xf32>
    %c0_26 = arith.constant 0 : index
    %c0_27 = arith.constant 0 : index
    %26 = vector.load %arg8[%c0_26, %c0_27] : memref<10x48xf32, #tpu.memory_space<vmem>>, vector<10x48xf32>
    tpu.vector_store %arg8[%c0_26, %c0_27], %25 {strides = array<i32>} : memref<10x48xf32, #tpu.memory_space<vmem>>, vector<10x48xf32>,
    %c1_28 = arith.constant 1 : index
    %c0_29 = arith.constant 0 : index
    %27 = vector.load %arg8[%c1_28, %c0_29] : memref<10x48xf32, #tpu.memory_space<vmem>>, vector<8x48xf32>
    tpu.vector_store %arg8[%c1_28, %c0_29], %24 {strides = array<i32>} : memref<10x48xf32, #tpu.memory_space<vmem>>, vector<8x48xf32>,
    %c0_30 = arith.constant 0 : index
    %c0_31 = arith.constant 0 : index
    %28 = vector.load %arg5[%c0_30, %c0_31] : memref<1x32xf32, #tpu.memory_space<vmem>>, vector<1x32xf32>
    %29 = vector.shape_cast %28 : vector<1x32xf32> to vector<1x32xf32>
    %30 = vector.broadcast %29 : vector<1x32xf32> to vector<8x32xf32>
    %c0_32 = arith.constant 0 : index
    %c0_33 = arith.constant 0 : index
    %31 = vector.load %arg8[%c0_32, %c0_33] : memref<10x48xf32, #tpu.memory_space<vmem>>, vector<8x48xf32>
    %c0_34 = arith.constant 0 : index
    %c0_35 = arith.constant 0 : index
    %c0_36 = arith.constant 0 : index
    %32 = vector.load %arg4[%c0_34, %c0_35, %c0_36] : memref<3x48x32xf32, #tpu.memory_space<vmem>>, vector<1x48x32xf32>
    %33 = vector.shape_cast %32 : vector<1x48x32xf32> to vector<48x32xf32>
    %cst_37 = arith.constant dense<0.000000e+00> : vector<8x32xf32>
    %34 = tpu.matmul %31, %33, %cst_37 {dimension_numbers = #tpu.dot_dimension_numbers<[1], [0], [0], [1], [0, 0, 1, 1], [], []>} : vector<8x48xf32>, vector<48x32xf32>, vector<8x32xf32> -> vector<8x32xf32>
    %35 = arith.addf %30, %34 : vector<8x32xf32>
    %c1_38 = arith.constant 1 : index
    %c0_39 = arith.constant 0 : index
    %36 = vector.load %arg8[%c1_38, %c0_39] : memref<10x48xf32, #tpu.memory_space<vmem>>, vector<8x48xf32>
    %c1_40 = arith.constant 1 : index
    %c0_41 = arith.constant 0 : index
    %c0_42 = arith.constant 0 : index
    %37 = vector.load %arg4[%c1_40, %c0_41, %c0_42] : memref<3x48x32xf32, #tpu.memory_space<vmem>>, vector<1x48x32xf32>
    %38 = vector.shape_cast %37 : vector<1x48x32xf32> to vector<48x32xf32>
    %cst_43 = arith.constant dense<0.000000e+00> : vector<8x32xf32>
    %39 = tpu.matmul %36, %38, %cst_43 {dimension_numbers = #tpu.dot_dimension_numbers<[1], [0], [0], [1], [0, 0, 1, 1], [], []>} : vector<8x48xf32>, vector<48x32xf32>, vector<8x32xf32> -> vector<8x32xf32>
    %40 = arith.addf %35, %39 : vector<8x32xf32>
    %c2_44 = arith.constant 2 : index
    %c0_45 = arith.constant 0 : index
    %41 = vector.load %arg8[%c2_44, %c0_45] : memref<10x48xf32, #tpu.memory_space<vmem>>, vector<8x48xf32>
    %c2_46 = arith.constant 2 : index
    %c0_47 = arith.constant 0 : index
    %c0_48 = arith.constant 0 : index
    %42 = vector.load %arg4[%c2_46, %c0_47, %c0_48] : memref<3x48x32xf32, #tpu.memory_space<vmem>>, vector<1x48x32xf32>
    %43 = vector.shape_cast %42 : vector<1x48x32xf32> to vector<48x32xf32>
    %cst_49 = arith.constant dense<0.000000e+00> : vector<8x32xf32>
    %44 = tpu.matmul %41, %43, %cst_49 {dimension_numbers = #tpu.dot_dimension_numbers<[1], [0], [0], [1], [0, 0, 1, 1], [], []>} : vector<8x48xf32>, vector<48x32xf32>, vector<8x32xf32> -> vector<8x32xf32>
    %45 = arith.addf %40, %44 : vector<8x32xf32>
    %cst_50 = arith.constant 0.000000e+00 : f32
    %46 = vector.broadcast %cst_50 : f32 to vector<8x32xf32>
    %47 = arith.maximumf %45, %46 : vector<8x32xf32>
    %c0_51 = arith.constant 0 : index
    %c0_52 = arith.constant 0 : index
    %c0_53 = arith.constant 0 : index
    %48 = vector.load %arg6[%c0_51, %c0_52, %c0_53] : memref<1x8x32xf32, #tpu.memory_space<vmem>>, vector<1x8x32xf32>
    %49 = vector.shape_cast %48 : vector<1x8x32xf32> to vector<8x32xf32>
    %50 = vector.shape_cast %47 : vector<8x32xf32> to vector<1x8x32xf32>
    tpu.vector_store %arg6[%c0_51, %c0_52, %c0_53], %50 {strides = array<i32>} : memref<1x8x32xf32, #tpu.memory_space<vmem>>, vector<1x8x32xf32>,
    return
  }
  func.func @transform_0(%arg0: i32) -> (i32, i32, i32) {
    %c0_i32 = arith.constant 0 : i32
    %c0_i32_0 = arith.constant 0 : i32
    %c0_i32_1 = arith.constant 0 : i32
    return %arg0, %c0_i32, %c0_i32_0 : i32, i32, i32
  }
  func.func @transform_1(%arg0: i32) -> (i32, i32, i32) {
    %c0_i32 = arith.constant 0 : i32
    %c0_i32_0 = arith.constant 0 : i32
    %c0_i32_1 = arith.constant 0 : i32
    %c0_i32_2 = arith.constant 0 : i32
    return %c0_i32, %c0_i32_0, %c0_i32_1 : i32, i32, i32
  }
  func.func @transform_2(%arg0: i32) -> (i32, i32) {
    %c0_i32 = arith.constant 0 : i32
    %c0_i32_0 = arith.constant 0 : i32
    %c0_i32_1 = arith.constant 0 : i32
    return %c0_i32, %c0_i32_0 : i32, i32
  }
  func.func @transform_3(%arg0: i32) -> (i32, i32, i32) {
    %c0_i32 = arith.constant 0 : i32
    %c0_i32_0 = arith.constant 0 : i32
    %c0_i32_1 = arith.constant 0 : i32
    %c0_i32_2 = arith.constant 0 : i32
    return %c0_i32, %c0_i32_0, %c0_i32_1 : i32, i32, i32
  }
  func.func @transform_4(%arg0: i32) -> (i32, i32) {
    %c0_i32 = arith.constant 0 : i32
    %c0_i32_0 = arith.constant 0 : i32
    %c0_i32_1 = arith.constant 0 : i32
    return %c0_i32, %c0_i32_0 : i32, i32
  }
  func.func @transform_5(%arg0: i32) -> (i32, i32, i32) {
    %c0_i32 = arith.constant 0 : i32
    %c0_i32_0 = arith.constant 0 : i32
    %c0_i32_1 = arith.constant 0 : i32
    return %arg0, %c0_i32, %c0_i32_0 : i32, i32, i32
  }
}

</mosaic_0001>

<bundles_post_ra>
// kernel: tpu_custom_call.1
= control target key start
LH: loop header
LB: loop body
LE: loop exit
PB: predicated region body
PF: predicated region fallthrough
CT: control target
= control target key end

     0   :  { %10 = vsyncpa [#allocation5], 0  ;;  %s1333_s0 = inlined_call_operand.vmem [shape: f32[2,8,32], index: 0, kind: input, shape index: {}]   ;;  %s1334_s1 = inlined_call_operand.vmem [shape: f32[3,32,48], index: 1, kind: input, shape index: {}]   ;;  %s1335_s2 = inlined_call_operand.vmem [shape: f32[1,48], index: 2, kind: input, shape index: {}]   ;;  %s1336_s3 = inlined_call_operand.vmem [shape: f32[3,48,32], index: 3, kind: input, shape index: {}]   ;;  %s1337_s4 = inlined_call_operand.vmem [shape: f32[1,32], index: 4, kind: input, shape index: {}]   ;;  %s1338_s5 = inlined_call_operand.hbm [shape: f32[2,8,32], index: 5, kind: output, shape index: {}]  }
   0x1   :  { %12 = vsyncpa [#allocation5 + $0x1], 0  ;;  %s1093_s18 = smov 0   ;;  %s1095_s19 = smov 0  }
   0x2   :  { %s1097_s20 = smov 0   ;;  %s1099_s21 = smov 0  }
   0x3 LB: > { %s1114_s22 = sadd.s32 4294967295, %s1058_s21   ;;  %s805_s23 = sadd.s32 4294967294, %s1058_s21   ;;  %s1058_s21 = sphi %s1099_s21, %s1344_s21   ;;  %s1054_s20 = sphi %s1097_s20, %s1343_s20   ;;  %s1050_s19 = sphi %s1095_s19, %s1342_s19   ;;  %s1046_s18 = sphi %s1093_s18, %s1341_s18  }
   0x4   : > { %s1118_s24 = sadd.s32 1, %s1058_s21   ;;  %s135_s25 = sadd.s32 1, %s1054_s20 }
   0x5   : > { %s132_s26 = ssub.s32 %s1058_s21, %s1118_s24  ;;  %p145_p0 = scmp.ne.s32.totalorder %s1054_s20, %s1050_s19 }
   0x6   : > { %p133_p1 = scmp.eq.s32.totalorder %s132_s26, 0  ;;  %p146_p2 = scmp.eq.s32.totalorder %s1114_s22, 1 }
   0x7   : > { %p151_p3 = scmp.ne.s32.totalorder %s1050_s19, %s1046_s18  ;;  %p152_p4 = scmp.eq.s32.totalorder %s805_s23, 1 }
   0x8   : > { %s1129_s27 = scalar_select %p133_p1, %s1054_s20, %s135_s25  }
   0x9   : > { %p1131_p5 = por %p146_p2, %p145_p0  ;;  %p1135_p6 = por %p152_p4, %p151_p3 }
   0xa   : > { %p808_p7 = scmp.ge.s32.totalorder %s1058_s21, 1  ;;  %p189_p8 = scmp.lt.s32.totalorder %s1058_s21, 3 }
   0xc   : > { %p190_p9 = pnand %p808_p7, %p189_p8 }
   0xd   : > { %p216_p10 = scmp.lt.s32.totalorder (!%p190_p9), %s1114_s22, 1  ;;  %s213_s8 = sand.u32 (!%p190_p9), 1, %s1050_s19  }
   0xe   : > { %193 = sbr.rel (%p190_p9) target bundleno = 467 (0x1d3), region = 40  ;;  %s809_s11 = sshll.u32 (!%p190_p9), %s213_s8, 3 }
   0xf   : > { %s840_s12 = sshll.u32 (!%p190_p9), %s1114_s22, 7  ;;  %s1062_s26 = smov (!%p190_p9), [#allocation4]  }
  0x10   : > { %s744_s17 = scalar_lea.hbm (!%p190_p9), %s1338_s5, %s840_s12 }
  0x13   : > { %v237_v0 = vld [vmem:[%s1334_s1 + $0x18] sm:$0xff]  ;;  %v1060_v2 = vmov 0.0   ;;  %v236_v3 = vld [vmem:[%s1334_s1 + $0x10] sm:$0xff]  ;;  %vm220_vm0 = vcmask 261120   ;;  %vm222_vm1 = vcmask 254976   ;;  %s217_s13 = scalar_select %p216_p10, %s1114_s22, 1 }
  0x14   : > { %v816_v1 = vld [vmem:[%s1334_s1 + $0x38] sm:$0xff]  ;;  %879 = vmatprep.subr.mxu0 %v1060_v2  ;;  %890 = vmatprep.subr.mxu1 %v1060_v2  ;;  %v815_v4 = vld [vmem:[%s1334_s1 + $0x30] sm:$0xff]  ;;  %221 = vst.msk [vmem:[#allocation2] sm:$0xff] %vm220_vm0, %v1060_v2  ;;  %v235_v5 = vld [vmem:[%s1334_s1 + $0x8] sm:$0xff]  ;;  %vm1061_vm2 = vmmov 0   ;;  %vm473_vm3 = vcmask 392192  }
  0x15   : > { %880 = vmatpush3.msra.mxu0 %v237_v0  ;;  %891 = vmatpush3.msra.mxu1 %v816_v1  ;;  %223 = vst.msk [vmem:[#allocation2 + $0x8] sm:$0x3] %vm222_vm1, %v1060_v2  ;;  %v814_v6 = vld [vmem:[%s1334_s1 + $0x28] sm:$0xff]  ;;  %s810_s23 = sshll.u32 %s217_s13, 3  ;;  %v234_v7 = vld [vmem:[%s1334_s1] sm:$0xff]  ;;  %v821_v10 = vld [vmem:[%s1334_s1 + $0x58] sm:$0xff] }
  0x16   : > { %881 = vmatprep.subr.mxu0 %v1060_v2  ;;  %892 = vmatprep.subr.mxu1 %v1060_v2  ;;  %s219_s7 = scalar_lea.vmem %s1333_s0, %s810_s23  ;;  %v813_v9 = vld [vmem:[%s1334_s1 + $0x20] sm:$0xff]  ;;  %v820_v13 = vld [vmem:[%s1334_s1 + $0x50] sm:$0xff]  ;;  %v819_v14 = vld [vmem:[%s1334_s1 + $0x48] sm:$0xff]  ;;  %vm475_vm4 = vcmask 386048   ;;  %474 = vst.msk [vmem:[#allocation3] sm:$0xff] %vm473_vm3, %v1060_v2  ;;  %s215_s13 = scalar_lea.vmem [#allocation4], %s809_s11 }
  0x17   : > { %882 = vmatpush3.msra.mxu0 %v236_v3  ;;  %893 = vmatpush3.msra.mxu1 %v815_v4  ;;  %v224_v8 = vld [vmem:[%s219_s7] sm:$0xff]  ;;  %v491_v17 = vld [vmem:[%s1336_s3 + $0x28] sm:$0xff]  ;;  %v830_v18 = vld [vmem:[%s1336_s3 + $0x58] sm:$0xff]  ;;  %476 = vst.msk [vmem:[#allocation3 + $0x8] sm:$0x3] %vm475_vm4, %v1060_v2  ;;  %s746_s14 = sshll.u32 %s215_s13, 4  ;;  %s747_s14 = int_to_ptr.vmem [resolvable:$true] %s746_s14 }
  0x18   : > { %883 = vmatprep.subr.mxu0 %v1060_v2  ;;  %894 = vmatprep.subr.mxu1 %v1060_v2  ;;  %225 = vst.msk [vmem:[#allocation2 + $0x1] sm:$0xff] %vm220_vm0, %v224_v8  ;;  %v818_v15 = vld [vmem:[%s1334_s1 + $0x40] sm:$0xff]  ;;  %v829_v20 = vld [vmem:[%s1336_s3 + $0x50] sm:$0xff]  ;;  %v489_v21 = vld [vmem:[%s1336_s3 + $0x18] sm:$0xff]  ;;  %s733_s23 = scalar_lea.sflag [#allocation5], %s213_s8  ;;  %s998_s25 = scalar_lea.vmem %s747_s14, 128 }
  0x19   : > { %884 = vmatpush3.msra.mxu0 %v235_v5  ;;  %887 = vmatprep.mubr.msk.f32.mxu0 %vm1061_vm2, %v1060_v2  ;;  %v490_v19 = vld [vmem:[%s1336_s3 + $0x20] sm:$0xff]  ;;  %v828_v22 = vld [vmem:[%s1336_s3 + $0x48] sm:$0xff]  ;;  %v488_v23 = vld [vmem:[%s1336_s3 + $0x10] sm:$0xff]  ;;  %p999_p11 = scmp.ne.s32.totalorder %s747_s14, %s998_s25  ;;  %s1002_s22 = sshll.u32 %s1062_s26, 4  ;;  %s1003_s22 = int_to_ptr.vmem [resolvable:$false] %s1002_s22 }
  0x1a   : > { %885 = vmatprep.subr.mxu0 %v1060_v2  ;;  %895 = vmatpush3.msra.mxu1 %v814_v6  ;;  %v827_v24 = vld [vmem:[%s1336_s3 + $0x40] sm:$0xff]  ;;  %v487_v25 = vld [vmem:[%s1336_s3 + $0x8] sm:$0xff]  ;;  %v826_v26 = vld [vmem:[%s1336_s3 + $0x38] sm:$0xff]  ;;  %s1004_s30 = scalar_lea.vmem %s1003_s22, 256  ;;  %p1005_p0 = scmp.lt.s32.totalorder %s747_s14, %s1003_s22 }
  0x1b   : > { %886 = vmatpush3.msra.mxu0 %v234_v7  ;;  %896 = vmatprep.subr.mxu1 %v1060_v2  ;;  %v486_v27 = vld [vmem:[%s1336_s3] sm:$0xff]  ;;  %v825_v28 = vld [vmem:[%s1336_s3 + $0x30] sm:$0xff]  ;;  %v837_v40 = vld [vmem:[%s1336_s3 + $0x88] sm:$0xff]  ;;  %p1000_p12 = pnand %p999_p11, %p1131_p5  ;;  %p1006_p1 = scmp.lt.s32.totalorder %s1004_s30, %s998_s25 }
  0x1c   : > { %901 = vmatprep.subr.mxu0 %v1060_v2  ;;  %897 = vmatpush3.msra.mxu1 %v813_v9  ;;  %v811_v29 = vld [vmem:[%s1335_s2] ss:$0 sm:$0xff]  ;;  %v835_v44 = vld [vmem:[%s1336_s3 + $0x78] sm:$0xff]  ;;  %v834_v45 = vld [vmem:[%s1336_s3 + $0x70] sm:$0xff] }
  0x1d   : > { %898 = vmatprep.mubr.msk.f32.mxu1 %vm1061_vm2, %v1060_v2  ;;  %912 = vmatprep.subr.mxu1 %v1060_v2  ;;  %v836_v43 = vld [vmem:[%s1336_s3 + $0x80] sm:$0xff]  ;;  %v833_v46 = vld [vmem:[%s1336_s3 + $0x68] sm:$0xff]  ;;  %p1001_p13 = pneg %p1000_p12  ;;  %p1007_p2 = por %p1006_p1, %p1005_p0 }
  0x1e   : > { %v832_v47 = vld [vmem:[%s1336_s3 + $0x60] sm:$0xff] }
  0x1f   : > { %v233_v11 = vld [vmem:[#allocation2] sm:$0xff]  ;;  %p1008_p3 = pnand %p1007_p2, %p1001_p13 }
  0x20   : > { %v312_v12 = vld [vmem:[#allocation2 + $0x1] sm:$0xff]  ;;  %888 = vmatmul.mubr.msk.f32.vlgmr.msra.gmra.mxu0 %vm220_vm0, %v233_v11  ;;  %v823_v53 = vld [vmem:[%s1337_s4] ss:$0 sm:$0xff] }
  0x21   : > { %899 = vmatmul.mubr.msk.f32.vlgmr.msra.gmra.mxu1 %vm220_vm0, %v312_v12  ;;  %902 = vmatpush3.msra.mxu0 %v821_v10  ;;  %v392_v16 = vld [vmem:[#allocation2 + $0x2] sm:$0xff] }
  0x22   : > { %909 = vmatprep.mubr.msk.f32.mxu0 %vm1061_vm2, %v1060_v2  ;;  %903 = vmatprep.subr.mxu0 %v1060_v2 }
  0x23   : > { %924 = vmatprep.mubr.msk.f32.mxu1 %vm1061_vm2, %v1060_v2  ;;  %904 = vmatpush3.msra.mxu0 %v820_v13 }
  0x24   : > { %905 = vmatprep.subr.mxu0 %v1060_v2  ;;  %913 = vmatpush3.msra.mxu1 %v491_v17 }
  0x25   : > { %906 = vmatpush3.msra.mxu0 %v819_v14  ;;  %914 = vmatprep.subr.mxu1 %v1060_v2 }
  0x26   : > { %907 = vmatprep.subr.mxu0 %v1060_v2  ;;  %915 = vmatpush3.msra.mxu1 %v490_v19 }
  0x27   : > { %908 = vmatpush3.msra.mxu0 %v818_v15  ;;  %916 = vmatprep.subr.mxu1 %v1060_v2 }
  0x28   : > { %910 = vmatmul.mubr.msk.f32.vlgmr.msra.gmra.mxu0 %vm220_vm0, %v392_v16  ;;  %927 = vmatprep.subr.mxu0 %v1060_v2 }
  0x29   : > { %939 = vmatprep.mubr.msk.f32.mxu0 %vm1061_vm2, %v1060_v2  ;;  %928 = vmatpush3.msra.mxu0 %v830_v18 }
  0x2a   : > { %929 = vmatprep.subr.mxu0 %v1060_v2  ;;  %917 = vmatpush3.msra.mxu1 %v489_v21 }
  0x2b   : > { %930 = vmatpush3.msra.mxu0 %v829_v20  ;;  %918 = vmatprep.subr.mxu1 %v1060_v2 }
  0x2c   : > { %931 = vmatprep.subr.mxu0 %v1060_v2  ;;  %919 = vmatpush3.msra.mxu1 %v488_v23 }
  0x2d   : > { %932 = vmatpush3.msra.mxu0 %v828_v22  ;;  %920 = vmatprep.subr.mxu1 %v1060_v2 }
  0x2e   : > { %933 = vmatprep.subr.mxu0 %v1060_v2  ;;  %921 = vmatpush3.msra.mxu1 %v487_v25 }
  0x2f   : > { %934 = vmatpush3.msra.mxu0 %v827_v24  ;;  %922 = vmatprep.subr.mxu1 %v1060_v2 }
  0x30   : > { %935 = vmatprep.subr.mxu0 %v1060_v2  ;;  %923 = vmatpush3.msra.mxu1 %v486_v27 }
  0x31   : > { %936 = vmatpush3.msra.mxu0 %v826_v26  ;;  %942 = vmatprep.subr.mxu1 %v1060_v2 }
  0x32   : > { %937 = vmatprep.subr.mxu0 %v1060_v2 }
  0x33   : > { %938 = vmatpush3.msra.mxu0 %v825_v28 }
  0xe0   : > { %v307_v30 = vpop.f32.mrf.mxu0 }
  0xe1   : > { %v387_v31 = vpop.f32.mrf.mxu1  ;;  %v311_v34 = vadd.f32 %v811_v29, %v307_v30 }
  0xe2   : > { %v889_v32 = vpop.f32.mrf.mxu0 }
  0xe3   : > { %v900_v33 = vpop.f32.mrf.mxu1  ;;  %v391_v35 = vadd.f32 %v387_v31, %v311_v34 }
  0xe8   : > { %v467_v36 = vpop.f32.mrf.mxu0 }
  0xe9   : > { %v471_v37 = vadd.f32 %v467_v36, %v391_v35 }
  0xea   : > { %v911_v38 = vpop.f32.mrf.mxu0 }
  0xeb   : > { %v472_v39 = vmax.f32 %v471_v37, 0.0 }
  0xed   : > { %477 = vst.msk [vmem:[#allocation3 + $0x1] sm:$0xff] %vm473_vm3, %v472_v39 }
  0xf4   : > { %v485_v41 = vld [vmem:[#allocation3] sm:$0xff] }
  0xf5   : > { %v566_v42 = vld [vmem:[#allocation3 + $0x1] sm:$0xff]  ;;  %925 = vmatmul.mubr.msk.f32.vlgmr.msra.gmra.mxu1 %vm473_vm3, %v485_v41 }
  0xf6   : > { %940 = vmatmul.mubr.msk.f32.vlgmr.msra.gmra.mxu0 %vm473_vm3, %v566_v42  ;;  %943 = vmatpush3.msra.mxu1 %v837_v40  ;;  %v648_v48 = vld [vmem:[#allocation3 + $0x2] sm:$0xff] }
  0xf7   : > { %954 = vmatprep.mubr.msk.f32.mxu1 %vm1061_vm2, %v1060_v2  ;;  %944 = vmatprep.subr.mxu1 %v1060_v2 }
  0xf8   : > { %945 = vmatpush3.msra.mxu1 %v836_v43 }
  0xf9   : > { %946 = vmatprep.subr.mxu1 %v1060_v2 }
  0xfa   : > { %947 = vmatpush3.msra.mxu1 %v835_v44 }
  0xfb   : > { %948 = vmatprep.subr.mxu1 %v1060_v2 }
  0xfc   : > { %949 = vmatpush3.msra.mxu1 %v834_v45 }
  0xfd   : > { %950 = vmatprep.subr.mxu1 %v1060_v2 }
  0xfe   : > { %951 = vmatpush3.msra.mxu1 %v833_v46 }
  0xff   : > { %952 = vmatprep.subr.mxu1 %v1060_v2 }
 0x100   : > { %953 = vmatpush3.msra.mxu1 %v832_v47 }
 0x101   : > { %955 = vmatmul.mubr.msk.f32.vlgmr.msra.gmra.mxu1 %vm473_vm3, %v648_v48 }
 0x1b5   : > { %v561_v49 = vpop.f32.mrf.mxu1 }
 0x1b6   : > { %v643_v50 = vpop.f32.mrf.mxu0  ;;  %v565_v54 = vadd.f32 %v823_v53, %v561_v49 }
 0x1b7   : > { %v926_v51 = vpop.f32.mrf.mxu1 }
 0x1b8   : > { %v941_v52 = vpop.f32.mrf.mxu0  ;;  %v647_v55 = vadd.f32 %v643_v50, %v565_v54 }
 0x1c1   : > { %v725_v56 = vpop.f32.mrf.mxu1 }
 0x1c2   : > { %v729_v57 = vadd.f32 %v725_v56, %v647_v55 }
 0x1c3   : > { %v956_v58 = vpop.f32.mrf.mxu1 }
 0x1c4   : > { %v730_v59 = vmax.f32 %v729_v57, 0.0 }
 0x1c6   : > { %731 = vst.msk [vmem:[%s215_s13] sm:$0xff] %vm220_vm0, %v730_v59 }
 0x1c7   : > { %1011 = shalt.err (!%p1008_p3)
}
 0x1c8   : > { %s1012_s6 = scalar_lea.hbm %s744_s17, 128  ;;  %s1016_s9 = scalar_lea.hbm %s1338_s5, 256 }
 0x1c9   : > { %p1013_p4 = scmp.ne.s32.totalorder %s744_s17, %s1012_s6  ;;  %p1017_p9 = scmp.lt.s32.totalorder %s744_s17, %s1338_s5 }
 0x1ca   : > { %p1018_p10 = scmp.lt.s32.totalorder %s1016_s9, %s1012_s6 }
 0x1cb   : > { %p1014_p7 = pnand %p1013_p4, %p1131_p5 }
 0x1cc   : > { %p1019_p11 = por %p1018_p10, %p1017_p9 }
 0x1cd   : > { %p1015_p8 = pneg %p1014_p7 }
 0x1cf   : > { %p1020_p12 = pnand %p1019_p11, %p1015_p8 }
 0x1d1   : > { %1023 = shalt.err (!%p1020_p12)
}
 0x1d2   : > { %957 = dma.vmem_to_hbm [thread:$0]  (%p1131_p5), %s747_s14, 128, %s744_s17, %s733_s23  }
 0x1d3 PF: > { %p963_p13 = scmp.ge.s32.totalorder %s1058_s21, 2  ;;  %s758_s12 = sand.u32 1, %s1046_s18  }
 0x1d4   : > { %s759_s13 = scalar_lea.sflag [#allocation5], %s758_s12 }
 0x1d5   : > { %p960_p0 = pnand %p963_p13, %p1135_p6 }
 0x1d7   : > { %p961_p1 = pneg %p960_p0 }
 0x1d9   : > { %1041 = dma.done.wait (%p961_p1), %s759_s13, 128  }
 0x1da   : > { %1043 = vsyncadd (%p961_p1), %s759_s13, 4294967168  ;;  %p15_p2 = scmp.ge.s32.totalorder %s1118_s24, 4   ;;  %s1341_s18 = smov %s1050_s19 }
 0x1db   : > { %s1342_s19 = smov %s1054_s20  ;;  %s1343_s20 = smov %s1129_s27 }
 0x1dc   : > { %s1344_s21 = smov %s1118_s24  ;;  %17 = sbr.rel (!%p15_p2) target bundleno = 3 (0x3), region = 79 }
 0x1e1   :  { %764 = vsyncpa [#allocation5], 1 }
 0x1e2   :  { %766 = vsyncpa [#allocation5 + $0x1], 1 }

</bundles_post_ra>
